<compile_context>
chip_gen: v7x
topology: tpu7x:2x2x1
jax: 0.10.0
libtpu: 0.0.40
codegen_flags: <defaults>
</compile_context>

<pallas_src>
import functools

import numpy as np
import jax
import jax.numpy as jnp
from jax.experimental import pallas as pl
from jax.experimental.pallas import tpu as pltpu

GN_EPS = 1e-5  # torch.nn.GroupNorm default eps


def _shuffle_attn_kernel(x_ref, p_ref, o_ref, *, hw):
    """One grid step: TB samples x CM output channel-pairs.

    x_ref : (TB, 2, CM, HWP)  x viewed as (b, 2, c//2, HWP); axis 1 = shuffle half s
    p_ref : (6, CM, 1)        fused gate coefficients; row 2*i + s holds
                              [p_g, p_m, p_c][i] for shuffle half s
    o_ref : (TB, CM, 2*HWP)   post-shuffle layout: lanes [s*HWP:(s+1)*HWP] of row m
                              hold the gated pre-shuffle channel s*(c//2) + m
    """
    hw_p = x_ref.shape[3]
    inv_hw = 1.0 / float(hw)
    for s in (0, 1):  # static unroll over the two shuffle halves (no transpose needed)
        x = x_ref[:, s, :, :].astype(jnp.float32)              # (TB, CM, HWP)
        p_g = p_ref[0 + s]                                      # (CM, 1)
        p_m = p_ref[2 + s]
        p_c = p_ref[4 + s]
        # Per-row mean / variance over the true hw elements (padded lanes are zero,
        # so they do not contribute to the sums; divide by the true count).
        mean = jnp.sum(x, axis=-1, keepdims=True) * inv_hw      # (TB, CM, 1)
        ex2 = jnp.sum(x * x, axis=-1, keepdims=True) * inv_hw
        var = jnp.maximum(ex2 - mean * mean, 0.0)               # one-pass biased var, f32
        rstd = jax.lax.rsqrt(var + GN_EPS)                      # EUP
        a = p_g * rstd                                          # == 0 for channel-attn rows
        bcf = p_m * mean + p_c - a * mean
        y = x * jax.nn.sigmoid(a * x + bcf)                     # both branches, one fused pass
        o_ref[:, :, s * hw_p:(s + 1) * hw_p] = y.astype(o_ref.dtype)


def _fused_gate_params(cweight, cbias, sweight, sbias, gn_gamma, gn_beta, c, C2):
    """Per pre-shuffle channel k: gate(x) = sigmoid(p_g*rstd*x + p_m*mean + p_c - p_g*rstd*mean)."""
    cw = jnp.reshape(cweight, (C2,)).astype(jnp.float32)
    cb = jnp.reshape(cbias, (C2,)).astype(jnp.float32)
    sw = jnp.reshape(sweight, (C2,)).astype(jnp.float32)
    sb = jnp.reshape(sbias, (C2,)).astype(jnp.float32)
    gm = jnp.reshape(gn_gamma, (C2,)).astype(jnp.float32)
    bt = jnp.reshape(gn_beta, (C2,)).astype(jnp.float32)

    q = jnp.arange(c) % (2 * C2)
    is_ch = q < C2                              # first half of each group -> channel attention
    idx = jnp.where(is_ch, q, q - C2)
    p_g = jnp.where(is_ch, 0.0, sw[idx] * gm[idx])
    p_m = jnp.where(is_ch, cw[idx], 0.0)
    p_c = jnp.where(is_ch, cb[idx], sw[idx] * bt[idx] + sb[idx])
    # (3, c) -> (6, c//2, 1); row 2*i + s corresponds to coefficient i of shuffle half s.
    return jnp.stack([p_g, p_m, p_c], axis=0).reshape(6, c // 2)[..., None]


def _pick_tiles(b, half_c, hw_p, target_bytes=2 << 20):
    """Pick (TB, CM): sublane-dense, ~target-sized blocks, >=2 grid steps when possible."""
    row_bytes = 2 * hw_p * 4            # one output row (both shuffle halves), f32
    TB, CM = 1, half_c
    sample_bytes = half_c * row_bytes
    if sample_bytes > target_bytes and half_c % 8 == 0:
        # Large feature maps / many channels: tile the c//2 axis. All reductions are
        # per-row, so no cross-tile accumulation is needed.
        CM = 8
        m = 16
        while m < half_c:
            if half_c % m == 0 and m * row_bytes <= target_bytes:
                CM = m
            m += 8
    elif sample_bytes <= target_bytes:
        # Small per-sample footprint: batch samples per step, but keep >=2 grid steps
        # (v7x has 2 TensorCores; a length-1 parallel grid would idle one of them).
        for cand in range(2, b + 1):
            if b % cand == 0 and cand * sample_bytes <= target_bytes and b // cand >= 2:
                TB = cand
    # TODO(synk): extremely large H*W with half_c % 8 != 0 would need an hw-tiled
    # reduction path; not implemented (single-row blocks already cover common shapes).
    return TB, CM


def shuffle_attention_pallas(x, cweight, cbias, sweight, sbias, gn_gamma, gn_beta, G):
    """ShuffleAttention forward. x: (b, c, h, w) NCHW, same semantics as the PyTorch module."""
    b, c, h, w = x.shape
    assert c % (2 * G) == 0, "channels must be divisible by 2*G"
    C2 = c // (2 * G)
    half_c = c // 2
    hw = h * w
    hw_p = ((hw + 127) // 128) * 128    # lane-pad spatial axis to a multiple of 128

    params = _fused_gate_params(cweight, cbias, sweight, sbias, gn_gamma, gn_beta, c, C2)

    xf = x.reshape(b, c, hw)
    if hw_p != hw:
        # TODO(synk): the pad (and the slice below) each cost one extra HBM pass when
        # hw % 128 != 0; a fully fused masked-lane path would avoid them.
        xf = jnp.pad(xf, ((0, 0), (0, 0), (0, hw_p - hw)))
    xv = xf.reshape(b, 2, half_c, hw_p)  # free contiguous view: shuffle half s on axis 1

    TB, CM = _pick_tiles(b, half_c, hw_p)

    in_blk = TB * 2 * CM * hw_p * 4
    out_blk = TB * CM * 2 * hw_p * 4
    p_blk = 6 * ((CM + 7) // 8) * 8 * 128 * 4
    vmem_limit = int(min(max(4 * (in_blk + out_blk + p_blk) + (2 << 20), 32 << 20), 48 << 20))

    out = pl.pallas_call(
        functools.partial(_shuffle_attn_kernel, hw=hw),
        out_shape=jax.ShapeDtypeStruct((b, half_c, 2 * hw_p), x.dtype),
        grid_spec=pltpu.PrefetchScalarGridSpec(
            num_scalar_prefetch=0,
            grid=(b // TB, half_c // CM),
            in_specs=[
                pl.BlockSpec((TB, 2, CM, hw_p), lambda ib, im: (ib, 0, im, 0)),
                pl.BlockSpec((6, CM, 1), lambda ib, im: (0, im, 0)),
            ],
            out_specs=pl.BlockSpec((TB, CM, 2 * hw_p), lambda ib, im: (ib, im, 0)),
        ),
        compiler_params=pltpu.CompilerParams(
            dimension_semantics=("parallel", "parallel"),
            vmem_limit_bytes=vmem_limit,
        ),
    )(xv, params)

    # (b, c//2, 2*hw_p) is already in post-channel_shuffle channel order.
    if hw_p == hw:
        return out.reshape(b, c, h, w)   # free view
    return out.reshape(b, half_c, 2, hw_p)[..., :hw].reshape(b, c, h, w)


def shuffle_attention_ref(x, cweight, cbias, sweight, sbias, gn_gamma, gn_beta, G):
    """Pure-JAX reference mirroring the PyTorch forward exactly."""
    b, c, h, w = x.shape
    C2 = c // (2 * G)
    xg = x.reshape(b * G, 2 * C2, h, w)
    x0, x1 = xg[:, :C2], xg[:, C2:]
    cw = cweight.reshape(1, C2, 1, 1)
    cb = cbias.reshape(1, C2, 1, 1)
    sw = sweight.reshape(1, C2, 1, 1)
    sb = sbias.reshape(1, C2, 1, 1)
    gm = gn_gamma.reshape(1, C2, 1, 1)
    bt = gn_beta.reshape(1, C2, 1, 1)

    pooled = jnp.mean(x0, axis=(2, 3), keepdims=True)
    x_channel = x0 * jax.nn.sigmoid(cw * pooled + cb)

    mu = jnp.mean(x1, axis=(2, 3), keepdims=True)
    var = jnp.mean((x1 - mu) ** 2, axis=(2, 3), keepdims=True)
    x1n = (x1 - mu) / jnp.sqrt(var + GN_EPS) * gm + bt
    x_spatial = x1 * jax.nn.sigmoid(sw * x1n + sb)

    out = jnp.concatenate([x_channel, x_spatial], axis=1).reshape(b, c, h, w)
    out = out.reshape(b, 2, c // 2, h, w).transpose(0, 2, 1, 3, 4).reshape(b, c, h, w)
    return out


if __name__ == "__main__":
    B, C, H, W = 2, 32, 16, 16
    G = 8
    C2 = C // (2 * G)  # = 2

    key = jax.random.PRNGKey(0)
    kx, kp = jax.random.split(key)
    x = jax.random.normal(kx, (B, C, H, W), dtype=jnp.float32)

    # Module parameter shapes: (1, C2, 1, 1) for the four attention params, (C2,) for the
    # GroupNorm affine. Random values (module defaults of zeros/ones give trivial gates).
    pk = jax.random.normal(kp, (6, C2), dtype=jnp.float32) * 0.5
    cweight = pk[0].reshape(1, C2, 1, 1)
    cbias = pk[1].reshape(1, C2, 1, 1)
    sweight = pk[2].reshape(1, C2, 1, 1)
    sbias = pk[3].reshape(1, C2, 1, 1)
    gn_gamma = pk[4]
    gn_beta = pk[5]

    fn = jax.jit(shuffle_attention_pallas, static_argnames=("G",))
    out = fn(x, cweight, cbias, sweight, sbias, gn_gamma, gn_beta, G=G)
    out = jax.block_until_ready(out)

    ref = shuffle_attention_ref(x, cweight, cbias, sweight, sbias, gn_gamma, gn_beta, G)
    np.testing.assert_allclose(np.asarray(out), np.asarray(ref), rtol=1e-5, atol=1e-5)

    print("KERNEL_OK")
</pallas_src>

<mosaic_0001>
module attributes {stable_mosaic.version = 11 : i64} {
  func.func @_shuffle_attn_kernel(%arg0: i32, %arg1: i32, %arg2: memref<1x2x16x256xf32, #tpu.memory_space<vmem>>, %arg3: memref<6x16x1xf32, #tpu.memory_space<vmem>>, %arg4: memref<1x16x512xf32, #tpu.memory_space<vmem>>) attributes {dimension_semantics = [#tpu.dimension_semantics<parallel>, #tpu.dimension_semantics<parallel>], iteration_bounds = array<i64: 2, 1>, scalar_prefetch = 0 : i64, scratch_operands = 0 : i64, tpu.core_type = #tpu.core_type<tc>, window_params = [{transform_indices = @transform_0, window_bounds = array<i64: 1, 2, 16, 256>}, {transform_indices = @transform_1, window_bounds = array<i64: 6, 16, 1>}, {transform_indices = @transform_2, window_bounds = array<i64: 1, 16, 512>}]} {
    %c0 = arith.constant 0 : index
    %c0_0 = arith.constant 0 : index
    %c0_1 = arith.constant 0 : index
    %c0_2 = arith.constant 0 : index
    %0 = vector.load %arg2[%c0, %c0_0, %c0_1, %c0_2] : memref<1x2x16x256xf32, #tpu.memory_space<vmem>>, vector<1x1x16x256xf32>
    %1 = vector.shape_cast %0 : vector<1x1x16x256xf32> to vector<1x16x256xf32>
    %c0_3 = arith.constant 0 : index
    %c0_4 = arith.constant 0 : index
    %c0_5 = arith.constant 0 : index
    %2 = vector.load %arg3[%c0_3, %c0_4, %c0_5] : memref<6x16x1xf32, #tpu.memory_space<vmem>>, vector<1x16x1xf32>
    %3 = vector.shape_cast %2 : vector<1x16x1xf32> to vector<16x1xf32>
    %c2 = arith.constant 2 : index
    %c0_6 = arith.constant 0 : index
    %c0_7 = arith.constant 0 : index
    %4 = vector.load %arg3[%c2, %c0_6, %c0_7] : memref<6x16x1xf32, #tpu.memory_space<vmem>>, vector<1x16x1xf32>
    %5 = vector.shape_cast %4 : vector<1x16x1xf32> to vector<16x1xf32>
    %c4 = arith.constant 4 : index
    %c0_8 = arith.constant 0 : index
    %c0_9 = arith.constant 0 : index
    %6 = vector.load %arg3[%c4, %c0_8, %c0_9] : memref<6x16x1xf32, #tpu.memory_space<vmem>>, vector<1x16x1xf32>
    %7 = vector.shape_cast %6 : vector<1x16x1xf32> to vector<16x1xf32>
    %cst = arith.constant dense<0.000000e+00> : vector<1x16xf32>
    %8 = vector.multi_reduction <add>, %1, %cst [2] : vector<1x16x256xf32> to vector<1x16xf32>
    %9 = vector.shape_cast %8 : vector<1x16xf32> to vector<1x16x1xf32>
    %cst_10 = arith.constant 3.906250e-03 : f32
    %10 = vector.broadcast %cst_10 : f32 to vector<1x16x1xf32>
    %11 = arith.mulf %9, %10 : vector<1x16x1xf32>
    %12 = arith.mulf %1, %1 : vector<1x16x256xf32>
    %cst_11 = arith.constant dense<0.000000e+00> : vector<1x16xf32>
    %13 = vector.multi_reduction <add>, %12, %cst_11 [2] : vector<1x16x256xf32> to vector<1x16xf32>
    %14 = vector.shape_cast %13 : vector<1x16xf32> to vector<1x16x1xf32>
    %cst_12 = arith.constant 3.906250e-03 : f32
    %15 = vector.broadcast %cst_12 : f32 to vector<1x16x1xf32>
    %16 = arith.mulf %14, %15 : vector<1x16x1xf32>
    %17 = arith.mulf %11, %11 : vector<1x16x1xf32>
    %18 = arith.subf %16, %17 : vector<1x16x1xf32>
    %cst_13 = arith.constant 0.000000e+00 : f32
    %19 = vector.broadcast %cst_13 : f32 to vector<1x16x1xf32>
    %20 = arith.maximumf %18, %19 : vector<1x16x1xf32>
    %cst_14 = arith.constant 9.99999974E-6 : f32
    %21 = vector.broadcast %cst_14 : f32 to vector<1x16x1xf32>
    %22 = arith.addf %20, %21 : vector<1x16x1xf32>
    %23 = math.rsqrt %22 : vector<1x16x1xf32>
    %24 = vector.shape_cast %3 : vector<16x1xf32> to vector<1x16x1xf32>
    %25 = arith.mulf %24, %23 : vector<1x16x1xf32>
    %26 = vector.shape_cast %5 : vector<16x1xf32> to vector<1x16x1xf32>
    %27 = arith.mulf %26, %11 : vector<1x16x1xf32>
    %28 = vector.shape_cast %7 : vector<16x1xf32> to vector<1x16x1xf32>
    %29 = arith.addf %27, %28 : vector<1x16x1xf32>
    %30 = arith.mulf %25, %11 : vector<1x16x1xf32>
    %31 = arith.subf %29, %30 : vector<1x16x1xf32>
    %32 = vector.broadcast %25 : vector<1x16x1xf32> to vector<1x16x256xf32>
    %33 = arith.mulf %32, %1 : vector<1x16x256xf32>
    %34 = vector.broadcast %31 : vector<1x16x1xf32> to vector<1x16x256xf32>
    %35 = arith.addf %33, %34 : vector<1x16x256xf32>
    %36 = arith.negf %35 : vector<1x16x256xf32>
    %37 = math.exp %36 : vector<1x16x256xf32>
    %cst_15 = arith.constant 1.000000e+00 : f32
    %38 = vector.broadcast %cst_15 : f32 to vector<1x16x256xf32>
    %39 = arith.addf %38, %37 : vector<1x16x256xf32>
    %40 = arith.divf %38, %39 : vector<1x16x256xf32>
    %41 = arith.mulf %1, %40 : vector<1x16x256xf32>
    %c0_16 = arith.constant 0 : index
    %c0_17 = arith.constant 0 : index
    %c0_18 = arith.constant 0 : index
    %42 = vector.load %arg4[%c0_16, %c0_17, %c0_18] : memref<1x16x512xf32, #tpu.memory_space<vmem>>, vector<1x16x256xf32>
    tpu.vector_store %arg4[%c0_16, %c0_17, %c0_18], %41 {strides = array<i32>} : memref<1x16x512xf32, #tpu.memory_space<vmem>>, vector<1x16x256xf32>,
    %c0_19 = arith.constant 0 : index
    %c1 = arith.constant 1 : index
    %c0_20 = arith.constant 0 : index
    %c0_21 = arith.constant 0 : index
    %43 = vector.load %arg2[%c0_19, %c1, %c0_20, %c0_21] : memref<1x2x16x256xf32, #tpu.memory_space<vmem>>, vector<1x1x16x256xf32>
    %44 = vector.shape_cast %43 : vector<1x1x16x256xf32> to vector<1x16x256xf32>
    %c1_22 = arith.constant 1 : index
    %c0_23 = arith.constant 0 : index
    %c0_24 = arith.constant 0 : index
    %45 = vector.load %arg3[%c1_22, %c0_23, %c0_24] : memref<6x16x1xf32, #tpu.memory_space<vmem>>, vector<1x16x1xf32>
    %46 = vector.shape_cast %45 : vector<1x16x1xf32> to vector<16x1xf32>
    %c3 = arith.constant 3 : index
    %c0_25 = arith.constant 0 : index
    %c0_26 = arith.constant 0 : index
    %47 = vector.load %arg3[%c3, %c0_25, %c0_26] : memref<6x16x1xf32, #tpu.memory_space<vmem>>, vector<1x16x1xf32>
    %48 = vector.shape_cast %47 : vector<1x16x1xf32> to vector<16x1xf32>
    %c5 = arith.constant 5 : index
    %c0_27 = arith.constant 0 : index
    %c0_28 = arith.constant 0 : index
    %49 = vector.load %arg3[%c5, %c0_27, %c0_28] : memref<6x16x1xf32, #tpu.memory_space<vmem>>, vector<1x16x1xf32>
    %50 = vector.shape_cast %49 : vector<1x16x1xf32> to vector<16x1xf32>
    %cst_29 = arith.constant dense<0.000000e+00> : vector<1x16xf32>
    %51 = vector.multi_reduction <add>, %44, %cst_29 [2] : vector<1x16x256xf32> to vector<1x16xf32>
    %52 = vector.shape_cast %51 : vector<1x16xf32> to vector<1x16x1xf32>
    %cst_30 = arith.constant 3.906250e-03 : f32
    %53 = vector.broadcast %cst_30 : f32 to vector<1x16x1xf32>
    %54 = arith.mulf %52, %53 : vector<1x16x1xf32>
    %55 = arith.mulf %44, %44 : vector<1x16x256xf32>
    %cst_31 = arith.constant dense<0.000000e+00> : vector<1x16xf32>
    %56 = vector.multi_reduction <add>, %55, %cst_31 [2] : vector<1x16x256xf32> to vector<1x16xf32>
    %57 = vector.shape_cast %56 : vector<1x16xf32> to vector<1x16x1xf32>
    %cst_32 = arith.constant 3.906250e-03 : f32
    %58 = vector.broadcast %cst_32 : f32 to vector<1x16x1xf32>
    %59 = arith.mulf %57, %58 : vector<1x16x1xf32>
    %60 = arith.mulf %54, %54 : vector<1x16x1xf32>
    %61 = arith.subf %59, %60 : vector<1x16x1xf32>
    %cst_33 = arith.constant 0.000000e+00 : f32
    %62 = vector.broadcast %cst_33 : f32 to vector<1x16x1xf32>
    %63 = arith.maximumf %61, %62 : vector<1x16x1xf32>
    %cst_34 = arith.constant 9.99999974E-6 : f32
    %64 = vector.broadcast %cst_34 : f32 to vector<1x16x1xf32>
    %65 = arith.addf %63, %64 : vector<1x16x1xf32>
    %66 = math.rsqrt %65 : vector<1x16x1xf32>
    %67 = vector.shape_cast %46 : vector<16x1xf32> to vector<1x16x1xf32>
    %68 = arith.mulf %67, %66 : vector<1x16x1xf32>
    %69 = vector.shape_cast %48 : vector<16x1xf32> to vector<1x16x1xf32>
    %70 = arith.mulf %69, %54 : vector<1x16x1xf32>
    %71 = vector.shape_cast %50 : vector<16x1xf32> to vector<1x16x1xf32>
    %72 = arith.addf %70, %71 : vector<1x16x1xf32>
    %73 = arith.mulf %68, %54 : vector<1x16x1xf32>
    %74 = arith.subf %72, %73 : vector<1x16x1xf32>
    %75 = vector.broadcast %68 : vector<1x16x1xf32> to vector<1x16x256xf32>
    %76 = arith.mulf %75, %44 : vector<1x16x256xf32>
    %77 = vector.broadcast %74 : vector<1x16x1xf32> to vector<1x16x256xf32>
    %78 = arith.addf %76, %77 : vector<1x16x256xf32>
    %79 = arith.negf %78 : vector<1x16x256xf32>
    %80 = math.exp %79 : vector<1x16x256xf32>
    %cst_35 = arith.constant 1.000000e+00 : f32
    %81 = vector.broadcast %cst_35 : f32 to vector<1x16x256xf32>
    %82 = arith.addf %81, %80 : vector<1x16x256xf32>
    %83 = arith.divf %81, %82 : vector<1x16x256xf32>
    %84 = arith.mulf %44, %83 : vector<1x16x256xf32>
    %c0_36 = arith.constant 0 : index
    %c0_37 = arith.constant 0 : index
    %c256 = arith.constant 256 : index
    %85 = vector.load %arg4[%c0_36, %c0_37, %c256] : memref<1x16x512xf32, #tpu.memory_space<vmem>>, vector<1x16x256xf32>
    tpu.vector_store %arg4[%c0_36, %c0_37, %c256], %84 {strides = array<i32>} : memref<1x16x512xf32, #tpu.memory_space<vmem>>, vector<1x16x256xf32>,
    return
  }
  func.func @transform_0(%arg0: i32, %arg1: i32) -> (i32, i32, i32, i32) {
    %c0_i32 = arith.constant 0 : i32
    %c0_i32_0 = arith.constant 0 : i32
    %c0_i32_1 = arith.constant 0 : i32
    return %arg0, %c0_i32, %arg1, %c0_i32_0 : i32, i32, i32, i32
  }
  func.func @transform_1(%arg0: i32, %arg1: i32) -> (i32, i32, i32) {
    %c0_i32 = arith.constant 0 : i32
    %c0_i32_0 = arith.constant 0 : i32
    %c0_i32_1 = arith.constant 0 : i32
    return %c0_i32, %arg1, %c0_i32_0 : i32, i32, i32
  }
  func.func @transform_2(%arg0: i32, %arg1: i32) -> (i32, i32, i32) {
    %c0_i32 = arith.constant 0 : i32
    %c0_i32_0 = arith.constant 0 : i32
    return %arg0, %arg1, %c0_i32 : i32, i32, i32
  }
}

</mosaic_0001>

<bundles_post_ra>
// kernel: shuffle_attention_pallas.1
= control target key start
LH: loop header
LB: loop body
LE: loop exit
PB: predicated region body
PF: predicated region fallthrough
CT: control target
= control target key end

     0   :  { %s690_s9 = smov 0   ;;  %s692_s10 = smov 0   ;;  %s828_s0 = inlined_call_operand.vmem [shape: f32[2,2,16,256], index: 0, kind: input, shape index: {}]   ;;  %s829_s1 = inlined_call_operand.vmem [shape: f32[6,16,1], index: 1, kind: input, shape index: {}]   ;;  %s830_s2 = inlined_call_operand.vmem [shape: f32[2,16,512], index: 2, kind: output, shape index: {}]  }
   0x1   :  { %s694_s11 = smov 0  }
   0x2 LB: > { %s24_s12 = sadd.s32 1, %s668_s10  ;;  %p552_p0 = scmp.ge.s32.totalorder %s672_s11, 1  ;;  %s672_s11 = sphi %s694_s11, %s12_s11   ;;  %s668_s10 = sphi %s692_s10, %s832_s10   ;;  %s664_s9 = sphi %s690_s9, %s831_s9  }
   0x3   : > { %p26_p1 = scmp.ge.s32.totalorder %s24_s12, 2  ;;  %p145_p2 = scmp.lt.s32.totalorder %s672_s11, 3 }
   0x5   : > { %s834_s12 = smov (%p26_p1, %s24_s12), 0  ;;  %p146_p3 = pnand %p552_p0, %p145_p2 }
   0x6   : > { %p183_p4 = scmp.lt.s32.totalorder (!%p146_p3), %s664_s9, 1  ;;  %v674_v24 = vmov (!%p146_p3), 0   ;;  %v215_v57 = vld [vmem:[%s829_s1 + $0x8] sm:$0xff] (!%p146_p3)  ;;  %v214_v58 = vld [vmem:[%s829_s1] sm:$0xff] (!%p146_p3)  ;;  %v569_v63 = vld [vmem:[%s829_s1 + $0x10] sm:$0xff] (!%p146_p3) }
   0x7   : > { %149 = sbr.rel (%p146_p3) target bundleno = 378 (0x17a), region = 28  ;;  %609 = vset.pattern.permute.xlu1 (!%p146_p3), %v674_v24  ;;  %608 = vset.pattern.permute.xlu0 (!%p146_p3), %v674_v24 }
   0xe   : > { %s836_s9 = smov (!%p183_p4, %s664_s9), 1 }
   0xf   : > { %s581_s13 = sshll.u32 %s836_s9, 6 }
  0x10   : > { %s191_s16 = scalar_lea.vmem %s828_s0, %s581_s13  ;;  %s208_s20 = scalar_lea.vmem %s830_s2, %s581_s13 }
  0x11   : > { %v716_v0 = vld [vmem:[%s191_s16 + $0x20] sm:$0xff]  ;;  %v718_v1 = vld [vmem:[%s191_s16 + $0x28] sm:$0xff]  ;;  %v726_v5 = vld [vmem:[%s191_s16 + $0x30] sm:$0xff] }
  0x12   : > { %v720_v2 = vld [vmem:[%s191_s16] sm:$0xff]  ;;  %v336_v3 = vadd.f32 %v718_v1, %v716_v0  ;;  %v724_v4 = vld [vmem:[%s191_s16 + $0x8] sm:$0xff]  ;;  %v728_v6 = vld [vmem:[%s191_s16 + $0x38] sm:$0xff]  ;;  %v346_v17 = vmul.f32 %v726_v5, %v726_v5  ;;  %v344_v20 = vmul.f32 %v716_v0, %v716_v0  ;;  %v345_v21 = vmul.f32 %v718_v1, %v718_v1 }
  0x13   : > { %v222_v7 = vadd.f32 %v724_v4, %v720_v2  ;;  %v732_v8 = vld [vmem:[%s191_s16 + $0x10] sm:$0xff]  ;;  %v734_v9 = vld [vmem:[%s191_s16 + $0x18] sm:$0xff]  ;;  %v339_v10 = vadd.f32 %v728_v6, %v726_v5  ;;  %v230_v14 = vmul.f32 %v720_v2, %v720_v2  ;;  %v231_v15 = vmul.f32 %v724_v4, %v724_v4 }
  0x14   : > { %337 = vadd.xlane.f32.xlu1 %v336_v3  ;;  %v232_v11 = vmul.f32 %v732_v8, %v732_v8  ;;  %v233_v12 = vmul.f32 %v734_v9, %v734_v9  ;;  %v225_v13 = vadd.f32 %v734_v9, %v732_v8  ;;  %v347_v18 = vmul.f32 %v728_v6, %v728_v6 }
  0x15   : > { %223 = vadd.xlane.f32.xlu0 %v222_v7  ;;  %v234_v19 = vadd.f32 %v231_v15, %v230_v14  ;;  %v348_v23 = vadd.f32 %v345_v21, %v344_v20  ;;  %v557_v7 = vld [vmem:[%s829_s1 + $0x20] sm:$0xff]  ;;  %v558_v14 = vld [vmem:[%s829_s1 + $0x28] sm:$0xff]  ;;  %v571_v20 = vld [vmem:[%s829_s1 + $0x30] sm:$0xff] }
  0x16   : > { %v237_v16 = vadd.f32 %v233_v12, %v232_v11  ;;  %v351_v22 = vadd.f32 %v347_v18, %v346_v17  ;;  %v570_v12 = vld [vmem:[%s829_s1 + $0x18] sm:$0xff]  ;;  %v559_v15 = vld [vmem:[%s829_s1 + $0x40] sm:$0xff]  ;;  %v560_v21 = vld [vmem:[%s829_s1 + $0x48] sm:$0xff] }
  0x18   : > { %340 = vadd.xlane.f32.xlu1 %v339_v10 }
  0x19   : > { %226 = vadd.xlane.f32.xlu0 %v225_v13 }
  0x1c   : > { %238 = vadd.xlane.f32.xlu1 %v237_v16 }
  0x1d   : > { %235 = vadd.xlane.f32.xlu0 %v234_v19 }
  0x20   : > { %352 = vadd.xlane.f32.xlu1 %v351_v22 }
  0x21   : > { %349 = vadd.xlane.f32.xlu0 %v348_v23 }
  0xa1   : > { %v338_v25 = vpop.xlane.xlu1 %337 }
  0xa2   : > { %v224_v26 = vpop.xlane.xlu0 %223  ;;  %v342_v36 = vmul.f32 0.00390625, %v338_v25 }
  0xa3   : > { %v228_v29 = vmul.f32 0.00390625, %v224_v26  ;;  %v572_v26 = vld [vmem:[%s829_s1 + $0x38] sm:$0xff] }
  0xa4   : > { %v356_v47 = vmul.f32 %v342_v36, %v342_v36  ;;  %v368_v24 = vmul.f32 %v571_v20, %v342_v36 }
  0xa5   : > { %v341_v27 = vpop.xlane.xlu1 %340  ;;  %v242_v37 = vmul.f32 %v228_v29, %v228_v29  ;;  %v254_v13 = vmul.f32 %v557_v7, %v228_v29 }
  0xa6   : > { %v227_v28 = vpop.xlane.xlu0 %226  ;;  %v756_v32 = vmul.f32 0.00390625, %v341_v27  ;;  %v573_v27 = vld [vmem:[%s829_s1 + $0x50] sm:$0xff] }
  0xa7   : > { %v229_v30 = vmul.f32 0.00390625, %v227_v28  ;;  %v256_v19 = vadd.f32 %v559_v15, %v254_v13 }
  0xa8   : > { %v357_v43 = vmul.f32 %v756_v32, %v756_v32 }
  0xa9   : > { %v239_v31 = vpop.xlane.xlu1 %238  ;;  %v243_v34 = vmul.f32 %v229_v30, %v229_v30  ;;  %v255_v18 = vmul.f32 %v558_v14, %v229_v30 }
  0xaa   : > { %v241_v33 = vmul.f32 0.00390625, %v239_v31  ;;  %v236_v35 = vpop.xlane.xlu0 %235  ;;  %v369_v31 = vmul.f32 %v572_v26, %v756_v32 }
  0xab   : > { %v240_v38 = vmul.f32 0.00390625, %v236_v35  ;;  %v257_v25 = vadd.f32 %v560_v21, %v255_v18 }
  0xac   : > { %v245_v39 = vsub.f32 %v241_v33, %v243_v34  ;;  %v370_v33 = vadd.f32 %v573_v27, %v368_v24 }
  0xad   : > { %v244_v40 = vsub.f32 %v240_v38, %v242_v37  ;;  %v353_v41 = vpop.xlane.xlu1 %352 }
  0xae   : > { %v247_v42 = vmax.f32 %v245_v39, 0.0  ;;  %v355_v44 = vmul.f32 0.00390625, %v353_v41  ;;  %v350_v45 = vpop.xlane.xlu0 %349 }
  0xaf   : > { %v246_v46 = vmax.f32 %v244_v40, 0.0  ;;  %v354_v48 = vmul.f32 0.00390625, %v350_v45 }
  0xb0   : > { %v249_v49 = vadd.f32 1e-05, %v247_v42  ;;  %v359_v50 = vsub.f32 %v355_v44, %v357_v43 }
  0xb1   : > { %v248_v51 = vadd.f32 1e-05, %v246_v46  ;;  %v358_v52 = vsub.f32 %v354_v48, %v356_v47 }
  0xb2   : > { %610 = vrsqrt.f32 %v249_v49  ;;  %v361_v53 = vmax.f32 %v359_v50, 0.0 }
  0xb3   : > { %612 = vrsqrt.f32 %v248_v51  ;;  %v360_v54 = vmax.f32 %v358_v52, 0.0 }
  0xb4   : > { %v363_v55 = vadd.f32 1e-05, %v361_v53 }
  0xb5   : > { %v362_v56 = vadd.f32 1e-05, %v360_v54 }
  0xb7   : > { %614 = vrsqrt.f32 %v362_v56 }
  0xb8   : > { %616 = vrsqrt.f32 %v363_v55 }
  0xbc   : > { %v611_v59 = vpop.eup %610 }
  0xbd   : > { %v613_v60 = vpop.eup %612  ;;  %v253_v61 = vmul.f32 %v611_v59, %v215_v57 }
  0xbe   : > { %v252_v62 = vmul.f32 %v613_v60, %v214_v58 }
  0xbf   : > { %269 = vperm.xlu1 %609, %v253_v61   ;;  %v259_v23 = vmul.f32 %v253_v61, %v229_v30  ;;  %v574_v30 = vld [vmem:[%s829_s1 + $0x58] sm:$0xff] }
  0xc0   : > { %264 = vperm.xlu0 %608, %v252_v62   ;;  %v258_v17 = vmul.f32 %v252_v62, %v228_v29  ;;  %v371_v37 = vadd.f32 %v574_v30, %v369_v31 }
  0xc1   : > { %v615_v3 = vpop.eup %614  ;;  %v261_v28 = vsub.f32 %v257_v25, %v259_v23 }
  0xc2   : > { %v366_v10 = vmul.f32 %v615_v3, %v569_v63  ;;  %v617_v11 = vpop.eup %616  ;;  %v260_v22 = vsub.f32 %v256_v19, %v258_v17 }
  0xc3   : > { %v367_v16 = vmul.f32 %v617_v11, %v570_v12 }
  0xc4   : > { %378 = vperm.xlu1 %609, %v366_v10   ;;  %v372_v29 = vmul.f32 %v366_v10, %v342_v36 }
  0xc5   : > { %v373_v35 = vmul.f32 %v367_v16, %v756_v32 }
  0xc6   : > { %v374_v34 = vsub.f32 %v370_v33, %v372_v29 }
  0xc7   : > { %v375_v38 = vsub.f32 %v371_v37, %v373_v35 }
  0xc8   : > { %383 = vperm.xlu1 %609, %v367_v16  }
  0xcc   : > { %278 = vperm.xlu1 %609, %v260_v22  }
  0xd0   : > { %283 = vperm.xlu1 %609, %v261_v28  }
  0xd4   : > { %392 = vperm.xlu1 %609, %v374_v34  }
  0xd8   : > { %397 = vperm.xlu1 %609, %v375_v38  }
 0x13e   : > { %v270_v39 = vpop.permute.xlu1 %269 }
 0x13f   : > { %v265_v41 = vpop.permute.xlu0 %264  ;;  %v274_v47 = vmul.f32 %v270_v39, %v732_v8  ;;  %v275_v48 = vmul.f32 %v270_v39, %v734_v9 }
 0x140   : > { %v272_v36 = vmul.f32 %v265_v41, %v720_v2  ;;  %v273_v43 = vmul.f32 %v265_v41, %v724_v4 }
 0x143   : > { %v379_v40 = vpop.permute.xlu1 %378 }
 0x144   : > { %v386_v53 = vmul.f32 %v716_v0, %v379_v40  ;;  %v387_v54 = vmul.f32 %v718_v1, %v379_v40 }
 0x147   : > { %v384_v42 = vpop.permute.xlu1 %383 }
 0x148   : > { %v388_v60 = vmul.f32 %v726_v5, %v384_v42  ;;  %v389_v61 = vmul.f32 %v728_v6, %v384_v42 }
 0x14b   : > { %v279_v44 = vpop.permute.xlu1 %278 }
 0x14c   : > { %v286_v45 = vadd.f32 %v279_v44, %v272_v36  ;;  %v287_v46 = vadd.f32 %v279_v44, %v273_v43 }
 0x14e   : > { %v561_v32 = vmul.f32 -1.442695, %v286_v45  ;;  %v562_v49 = vmul.f32 -1.442695, %v287_v46 }
 0x14f   : > { %v284_v50 = vpop.permute.xlu1 %283 }
 0x150   : > { %618 = vpow2.f32 %v561_v32  ;;  %v288_v51 = vadd.f32 %v284_v50, %v274_v47  ;;  %v289_v52 = vadd.f32 %v284_v50, %v275_v48 }
 0x151   : > { %620 = vpow2.f32 %v562_v49 }
 0x152   : > { %v563_v55 = vmul.f32 -1.442695, %v288_v51  ;;  %v564_v56 = vmul.f32 -1.442695, %v289_v52 }
 0x153   : > { %v393_v57 = vpop.permute.xlu1 %392 }
 0x154   : > { %622 = vpow2.f32 %v563_v55  ;;  %v400_v58 = vadd.f32 %v393_v57, %v386_v53  ;;  %v401_v59 = vadd.f32 %v393_v57, %v387_v54 }
 0x155   : > { %624 = vpow2.f32 %v564_v56 }
 0x156   : > { %v575_v62 = vmul.f32 -1.442695, %v400_v58  ;;  %v576_v63 = vmul.f32 -1.442695, %v401_v59 }
 0x157   : > { %v398_v3 = vpop.permute.xlu1 %397 }
 0x158   : > { %626 = vpow2.f32 %v575_v62  ;;  %v402_v7 = vadd.f32 %v398_v3, %v388_v60  ;;  %v403_v10 = vadd.f32 %v398_v3, %v389_v61 }
 0x159   : > { %628 = vpow2.f32 %v576_v63 }
 0x15a   : > { %v619_v11 = vpop.eup %618  ;;  %v577_v12 = vmul.f32 -1.442695, %v402_v7  ;;  %v578_v15 = vmul.f32 -1.442695, %v403_v10 }
 0x15b   : > { %v621_v13 = vpop.eup %620  ;;  %v302_v14 = vadd.f32 1.0, %v619_v11 }
 0x15c   : > { %v303_v16 = vadd.f32 1.0, %v621_v13  ;;  %630 = vpow2.f32 %v577_v12 }
 0x15d   : > { %632 = vrcp.f32 %v302_v14 }
 0x15e   : > { %v623_v17 = vpop.eup %622  ;;  %634 = vrcp.f32 %v303_v16 }
 0x15f   : > { %v625_v18 = vpop.eup %624  ;;  %v304_v19 = vadd.f32 1.0, %v623_v17  ;;  %636 = vpow2.f32 %v578_v15 }
 0x160   : > { %v305_v20 = vadd.f32 1.0, %v625_v18 }
 0x161   : > { %638 = vrcp.f32 %v304_v19 }
 0x162   : > { %v627_v21 = vpop.eup %626  ;;  %640 = vrcp.f32 %v305_v20 }
 0x163   : > { %v629_v22 = vpop.eup %628  ;;  %v416_v23 = vadd.f32 1.0, %v627_v21 }
 0x164   : > { %v417_v24 = vadd.f32 1.0, %v629_v22 }
 0x165   : > { %642 = vrcp.f32 %v416_v23 }
 0x166   : > { %v631_v25 = vpop.eup %630  ;;  %644 = vrcp.f32 %v417_v24 }
 0x167   : > { %v633_v26 = vpop.eup %632  ;;  %v418_v27 = vadd.f32 1.0, %v631_v25 }
 0x168   : > { %v635_v28 = vpop.eup %634  ;;  %v314_v29 = vmul.f32 %v633_v26, %v720_v2 }
 0x169   : > { %v637_v31 = vpop.eup %636  ;;  %v315_v33 = vmul.f32 %v635_v28, %v724_v4  ;;  %646 = vrcp.f32 %v418_v27 }
 0x16a   : > { %318 = vst [vmem:[%s208_s20] sm:$0xff] %v314_v29  ;;  %v419_v30 = vadd.f32 1.0, %v637_v31 }
 0x16b   : > { %v639_v34 = vpop.eup %638  ;;  %319 = vst [vmem:[%s208_s20 + $0x8] sm:$0xff] %v315_v33 }
 0x16c   : > { %v641_v35 = vpop.eup %640  ;;  %v316_v37 = vmul.f32 %v639_v34, %v732_v8  ;;  %648 = vrcp.f32 %v419_v30 }
 0x16d   : > { %v317_v38 = vmul.f32 %v641_v35, %v734_v9 }
 0x16e   : > { %320 = vst [vmem:[%s208_s20 + $0x20] sm:$0xff] %v316_v37 }
 0x16f   : > { %v643_v39 = vpop.eup %642  ;;  %321 = vst [vmem:[%s208_s20 + $0x28] sm:$0xff] %v317_v38 }
 0x170   : > { %v645_v40 = vpop.eup %644  ;;  %v428_v2 = vmul.f32 %v643_v39, %v716_v0 }
 0x171   : > { %v429_v41 = vmul.f32 %v645_v40, %v718_v1 }
 0x172   : > { %432 = vst [vmem:[%s208_s20 + $0x10] sm:$0xff] %v428_v2 }
 0x173   : > { %v647_v4 = vpop.eup %646  ;;  %433 = vst [vmem:[%s208_s20 + $0x18] sm:$0xff] %v429_v41 }
 0x174   : > { %v430_v42 = vmul.f32 %v647_v4, %v726_v5 }
 0x176   : > { %v649_v36 = vpop.eup %648  ;;  %434 = vst [vmem:[%s208_s20 + $0x30] sm:$0xff] %v430_v42 }
 0x177   : > { %v431_v8 = vmul.f32 %v649_v36, %v728_v6 }
 0x179   : > { %435 = vst [vmem:[%s208_s20 + $0x38] sm:$0xff] %v431_v8 }
 0x17a PF: > { %s12_s11 = sadd.s32 1, %s672_s11   ;;  %s831_s9 = smov %s668_s10 }
 0x17b   : > { %p9_p5 = scmp.ge.s32.totalorder %s12_s11, 4   ;;  %s832_s10 = smov %s834_s12 }
 0x17d   :  { %11 = sbr.rel (!%p9_p5) target bundleno = 2 (0x2), region = 67 }

</bundles_post_ra>
